<compile_context>
chip_gen: v6e
topology: v6e:2x2x1
jax: 0.10.0
libtpu: 0.0.40
codegen_flags: <defaults>
</compile_context>

<pallas_src>
import functools
import math

import numpy as np

import jax
import jax.numpy as jnp
from jax.experimental import pallas as pl
from jax.experimental.pallas import tpu as pltpu


def _round_up(x: int, mult: int) -> int:
    return ((x + mult - 1) // mult) * mult


def _cdiv(a: int, b: int) -> int:
    return (a + b - 1) // b


@functools.lru_cache(maxsize=1)
def _vmem_limit_bytes() -> int:
    """Per-generation VMEM limit (~60% of physical, v7x-safe fallback)."""
    try:
        phys = int(pltpu.get_tpu_info().vmem_capacity_bytes)
    except Exception:
        phys = 64 * 1024 * 1024  # v7x per-TensorCore VMEM; safe everywhere
    return max(int(phys * 0.6), 16 * 1024 * 1024)


def _interp_taps(l_in: int, l_out: int):
    """lo/hi indices + weights for mode='linear', align_corners=True (host numpy)."""
    if l_out <= 1:
        coord = np.zeros((max(l_out, 1),), np.float64)
    else:
        coord = np.arange(l_out, dtype=np.float64) * ((l_in - 1) / (l_out - 1))
    lo = np.clip(np.floor(coord).astype(np.int64), 0, max(l_in - 1, 0))
    hi = np.minimum(lo + 1, l_in - 1)
    frac = (coord - lo).astype(np.float32)
    return lo, hi, (1.0 - frac).astype(np.float32), frac


@functools.lru_cache(maxsize=32)
def _dense_weights_host(l_in: int, l_out: int, dtype):
    """Dense W^T (L_in, L_out) interpolation matrix, built on host and cached."""
    lo, hi, w_lo, w_hi = _interp_taps(l_in, l_out)
    cols = np.arange(l_out)
    wt = np.zeros((l_in, l_out), np.float32)
    np.add.at(wt, (lo, cols), w_lo)
    np.add.at(wt, (hi, cols), w_hi)
    return wt.astype(dtype)


@functools.lru_cache(maxsize=32)
def _banded_plan(l_in: int, l_out: int):
    """Returns (tl, xb, n_t, n_xb) for the banded path, or None -> use dense."""
    if l_in < 512 or l_out < 512:
        return None
    tl = 512 if l_out >= 2048 else 256
    n_t = _cdiv(l_out, tl)
    if n_t < 2:
        return None
    lo, hi, _, _ = _interp_taps(l_in, l_out)
    t_first = np.arange(n_t) * tl
    t_last = np.minimum(t_first + tl, l_out) - 1
    starts = lo[t_first]
    widths = hi[t_last] - starts + 1
    xb = _round_up(max(128, int(widths.max())), 128)
    # Each tile's input window must fit inside 2 consecutive xb-aligned blocks.
    while np.any((starts % xb) + widths > 2 * xb):
        xb += 128
    if 2 * xb + 128 > l_in:
        return None  # banding would not shrink the working set
    return tl, xb, n_t, _cdiv(l_in, xb)


@functools.lru_cache(maxsize=32)
def _banded_weights_host(l_in: int, l_out: int, tl: int, xb: int, dtype):
    """Per-output-tile (2*xb, tl) weight bands + per-tile x block indices."""
    lo, hi, w_lo, w_hi = _interp_taps(l_in, l_out)
    n_t = _cdiv(l_out, tl)
    tile = np.arange(l_out) // tl
    base_t = (lo[np.arange(n_t) * tl] // xb) * xb       # aligned window start / tile
    xblk = (base_t // xb).astype(np.int32)              # x block index / tile
    base_j = base_t[tile]
    r_lo = lo - base_j
    r_hi = hi - base_j
    assert r_lo.min() >= 0 and r_hi.max() < 2 * xb      # coverage guaranteed by plan
    col = np.arange(l_out) % tl
    band = np.zeros((n_t, 2 * xb, tl), np.float32)
    np.add.at(band, (tile, r_lo, col), w_lo)
    np.add.at(band, (tile, r_hi, col), w_hi)
    return band.astype(dtype), xblk


def _choose_tm(m: int, per_row_bytes: int, resident_bytes: int, budget_bytes: int) -> int:
    avail = max(budget_bytes - resident_bytes, per_row_bytes * 8)
    tm = int(avail // per_row_bytes)
    tm = max(8, min(tm, 4096))              # large tiles amortize per-step overhead
    tm = (tm // 256) * 256 if tm >= 256 else (tm // 8) * 8
    if tm >= m:
        tm = m                              # single full-dim block is always legal
    if m > 8:
        tm = min(tm, _round_up(_cdiv(m, 2), 8))   # >=2 parallel steps (v7x megacore)
    return tm


# ----------------------------- kernels ---------------------------------------


def _dense_kernel(compute_dtype, x_ref, wt_ref, o_ref):
    x = x_ref[...].astype(compute_dtype)
    o_ref[...] = jnp.dot(
        x, wt_ref[...], preferred_element_type=jnp.float32
    ).astype(o_ref.dtype)


def _banded_kernel(l_in, xb, n_xb, compute_dtype, needs_mask,
                   xblk_ref, xlo_ref, xhi_ref, w_ref, o_ref):
    t = pl.program_id(0)
    b0 = xblk_ref[t]
    b1 = jnp.minimum(b0 + 1, n_xb - 1)
    x_lo = xlo_ref[...]
    x_hi = xhi_ref[...]
    if needs_mask:
        # Zero the lanes of the (ragged) last input block so stale VMEM cannot
        # contaminate the matmul (its weights are zero anyway).
        col = jax.lax.broadcasted_iota(jnp.int32, x_lo.shape, 1)
        x_lo = jnp.where(col < l_in - b0 * xb, x_lo, 0)
        x_hi = jnp.where(col < l_in - b1 * xb, x_hi, 0)
    x_lo = x_lo.astype(compute_dtype)
    x_hi = x_hi.astype(compute_dtype)
    w = w_ref[0]
    acc = jnp.dot(x_lo, w[:xb, :], preferred_element_type=jnp.float32)
    acc = acc + jnp.dot(x_hi, w[xb:, :], preferred_element_type=jnp.float32)
    o_ref[...] = acc.astype(o_ref.dtype)


# ----------------------------- wrappers ---------------------------------------


def _dense_path(x2d, l_in, l_out, out_dtype, compute_dtype, vmem_limit):
    m = x2d.shape[0]
    x_item = np.dtype(x2d.dtype).itemsize
    o_item = np.dtype(out_dtype).itemsize
    c_item = np.dtype(compute_dtype).itemsize

    wt = _dense_weights_host(l_in, l_out, compute_dtype)
    resident = l_in * l_out * c_item                                   # W^T (1x)
    per_row = 2 * (l_in * x_item + l_out * o_item) + (l_in * c_item + l_out * 4)
    tm = _choose_tm(m, per_row, resident, vmem_limit - 4 * 1024 * 1024)
    grid = (_cdiv(m, tm),)

    cost = pl.CostEstimate(
        flops=int(2 * m * l_in * l_out),
        transcendentals=0,
        bytes_accessed=int(m * l_in * x_item + m * l_out * o_item
                           + l_in * l_out * c_item),
    )
    kernel = functools.partial(_dense_kernel, compute_dtype)

    def call(single_buffer_w):
        w_kwargs = dict(pipeline_mode=pl.Buffered(1)) if single_buffer_w else {}
        return pl.pallas_call(
            kernel,
            out_shape=jax.ShapeDtypeStruct((m, l_out), out_dtype),
            grid=grid,
            in_specs=[
                pl.BlockSpec((tm, l_in), lambda i: (i, 0)),             # tiled M
                pl.BlockSpec((l_in, l_out), lambda i: (0, 0), **w_kwargs),  # W^T
            ],
            out_specs=pl.BlockSpec((tm, l_out), lambda i: (i, 0)),
            compiler_params=pltpu.CompilerParams(
                dimension_semantics=("parallel",),
                vmem_limit_bytes=int(vmem_limit),
            ),
            cost_estimate=cost,
        )(x2d, jnp.asarray(wt))

    try:
        return call(True)
    except Exception:
        # Fallback if this jax build rejects single-buffered (Buffered(1)) blocks.
        return call(False)


def _banded_path(x2d, l_in, l_out, out_dtype, compute_dtype, vmem_limit, plan):
    tl, xb, n_t, n_xb = plan
    m = x2d.shape[0]
    x_item = np.dtype(x2d.dtype).itemsize
    o_item = np.dtype(out_dtype).itemsize
    c_item = np.dtype(compute_dtype).itemsize

    band, xblk = _banded_weights_host(l_in, l_out, tl, xb, compute_dtype)
    resident = 2 * (2 * xb) * tl * c_item                 # double-buffered band
    per_row = 4 * xb * x_item + 2 * tl * o_item + 2 * xb * (c_item + 4) + tl * 4
    tm = _choose_tm(m, per_row, resident, vmem_limit - 4 * 1024 * 1024)
    grid = (n_t, _cdiv(m, tm))

    cost = pl.CostEstimate(
        flops=int(2 * m * (2 * xb) * tl * n_t),
        transcendentals=0,
        bytes_accessed=int(n_t * m * 2 * xb * x_item + m * l_out * o_item
                           + band.size * c_item),
    )
    kernel = functools.partial(
        _banded_kernel, l_in, xb, n_xb, compute_dtype, (l_in % xb) != 0)

    grid_spec = pltpu.PrefetchScalarGridSpec(
        num_scalar_prefetch=1,                 # per-tile x block offsets (SMEM)
        grid=grid,
        in_specs=[
            pl.BlockSpec((tm, xb), lambda t, i, blk: (i, blk[t])),
            pl.BlockSpec((tm, xb),
                         lambda t, i, blk: (i, jnp.minimum(blk[t] + 1, n_xb - 1))),
            pl.BlockSpec((1, 2 * xb, tl), lambda t, i, blk: (t, 0, 0)),
        ],
        out_specs=pl.BlockSpec((tm, tl), lambda t, i, blk: (i, t)),
    )
    return pl.pallas_call(
        kernel,
        out_shape=jax.ShapeDtypeStruct((m, l_out), out_dtype),
        grid_spec=grid_spec,
        compiler_params=pltpu.CompilerParams(
            dimension_semantics=("parallel", "parallel"),
            vmem_limit_bytes=int(vmem_limit),
        ),
        cost_estimate=cost,
    )(jnp.asarray(xblk), x2d, x2d, jnp.asarray(band))


def up_sample(x, scale_factor):
    """Pallas equivalent of up_sample(scale_factor).forward(x); x: (N, C, L)."""
    n, c, l_in = x.shape
    l_out = int(math.floor(l_in * scale_factor))
    out_dtype = x.dtype
    compute_dtype = jnp.bfloat16 if x.dtype == jnp.bfloat16 else jnp.float32

    m = n * c
    x2d = x.reshape(m, l_in)                 # free reshape (contiguous)
    vmem_limit = _vmem_limit_bytes()

    plan = _banded_plan(l_in, l_out)
    if plan is None:
        out2d = _dense_path(x2d, l_in, l_out, out_dtype, compute_dtype, vmem_limit)
    else:
        out2d = _banded_path(x2d, l_in, l_out, out_dtype, compute_dtype,
                             vmem_limit, plan)
    return out2d.reshape(n, c, l_out)


def _reference_up_sample(x, scale_factor):
    """Pure-JAX reference of F.interpolate(mode='linear', align_corners=True)."""
    n, c, l_in = x.shape
    l_out = int(math.floor(l_in * scale_factor))
    lo, hi, w_lo, w_hi = _interp_taps(l_in, l_out)
    xf = x.astype(jnp.float32)
    x_lo = jnp.take(xf, jnp.asarray(lo, dtype=jnp.int32), axis=-1)
    x_hi = jnp.take(xf, jnp.asarray(hi, dtype=jnp.int32), axis=-1)
    return x_lo * jnp.asarray(w_lo) + x_hi * jnp.asarray(w_hi)


if __name__ == "__main__":
    key = jax.random.PRNGKey(0)
    k1, k2 = jax.random.split(key)

    # 1) Small f32 case (dense path): (N, C, L) = (2, 4, 16), scale 2 -> (2, 4, 32).
    x_small = jax.random.normal(k1, (2, 4, 16), dtype=jnp.float32)
    out_small = jax.block_until_ready(up_sample(x_small, 2))
    ref_small = _reference_up_sample(x_small, 2)
    assert out_small.shape == (2, 4, 32), out_small.shape
    assert jnp.allclose(out_small.astype(jnp.float32), ref_small,
                        atol=1e-5, rtol=1e-5), \
        float(jnp.max(jnp.abs(out_small.astype(jnp.float32) - ref_small)))

    # 2) Longer bf16 case: exercises the banded path (L_out tiles, windowed x DMA),
    #    the bf16 MXU fast path, and ragged M / L_out / last-input-block handling.
    x_long = jax.random.normal(k2, (2, 2, 1400), dtype=jnp.bfloat16)
    out_long = jax.block_until_ready(up_sample(x_long, 2))
    ref_long = _reference_up_sample(x_long, 2)
    assert out_long.shape == (2, 2, 2800), out_long.shape
    assert jnp.allclose(out_long.astype(jnp.float32), ref_long,
                        atol=5e-2, rtol=5e-2), \
        float(jnp.max(jnp.abs(out_long.astype(jnp.float32) - ref_long)))

    print("KERNEL_OK")
</pallas_src>

<mosaic_0001>
module attributes {stable_mosaic.version = 11 : i64} {
  func.func @_dense_kernel(%arg0: i32, %arg1: memref<8x16xf32, #tpu.memory_space<vmem>>, %arg2: memref<16x32xf32, #tpu.memory_space<vmem>>, %arg3: memref<8x32xf32, #tpu.memory_space<vmem>>) attributes {dimension_semantics = [#tpu.dimension_semantics<parallel>], iteration_bounds = array<i64: 1>, scalar_prefetch = 0 : i64, scratch_operands = 0 : i64, tpu.core_type = #tpu.core_type<tc>, window_params = [{transform_indices = @transform_0, window_bounds = array<i64: 8, 16>}, {pipeline_mode = #tpu.pipeline_mode<synchronous>, transform_indices = @transform_1, window_bounds = array<i64: 16, 32>}, {transform_indices = @transform_2, window_bounds = array<i64: 8, 32>}]} {
    %c0 = arith.constant 0 : index
    %c0_0 = arith.constant 0 : index
    %0 = vector.load %arg1[%c0, %c0_0] : memref<8x16xf32, #tpu.memory_space<vmem>>, vector<8x16xf32>
    %c0_1 = arith.constant 0 : index
    %c0_2 = arith.constant 0 : index
    %1 = vector.load %arg2[%c0_1, %c0_2] : memref<16x32xf32, #tpu.memory_space<vmem>>, vector<16x32xf32>
    %cst = arith.constant dense<0.000000e+00> : vector<8x32xf32>
    %2 = tpu.matmul %0, %1, %cst {dimension_numbers = #tpu.dot_dimension_numbers<[1], [0], [0], [1], [0, 0, 1, 1], [], []>} : vector<8x16xf32>, vector<16x32xf32>, vector<8x32xf32> -> vector<8x32xf32>
    %c0_3 = arith.constant 0 : index
    %c0_4 = arith.constant 0 : index
    %3 = vector.load %arg3[%c0_3, %c0_4] : memref<8x32xf32, #tpu.memory_space<vmem>>, vector<8x32xf32>
    tpu.vector_store %arg3[%c0_3, %c0_4], %2 {strides = array<i32>} : memref<8x32xf32, #tpu.memory_space<vmem>>, vector<8x32xf32>,
    return
  }
  func.func @transform_0(%arg0: i32) -> (i32, i32) {
    %c0_i32 = arith.constant 0 : i32
    %c0_i32_0 = arith.constant 0 : i32
    return %arg0, %c0_i32 : i32, i32
  }
  func.func @transform_1(%arg0: i32) -> (i32, i32) {
    %c0_i32 = arith.constant 0 : i32
    %c0_i32_0 = arith.constant 0 : i32
    %c0_i32_1 = arith.constant 0 : i32
    return %c0_i32, %c0_i32_0 : i32, i32
  }
  func.func @transform_2(%arg0: i32) -> (i32, i32) {
    %c0_i32 = arith.constant 0 : i32
    %c0_i32_0 = arith.constant 0 : i32
    return %arg0, %c0_i32 : i32, i32
  }
}

module attributes {stable_mosaic.version = 11 : i64} {
  func.func @_dense_kernel(%arg0: i32, %arg1: memref<8x16xf32, #tpu.memory_space<vmem>>, %arg2: memref<16x32xf32, #tpu.memory_space<vmem>>, %arg3: memref<8x32xf32, #tpu.memory_space<vmem>>) attributes {dimension_semantics = [#tpu.dimension_semantics<parallel>], iteration_bounds = array<i64: 1>, scalar_prefetch = 0 : i64, scratch_operands = 0 : i64, tpu.core_type = #tpu.core_type<tc>, window_params = [{transform_indices = @transform_0, window_bounds = array<i64: 8, 16>}, {pipeline_mode = #tpu.pipeline_mode<synchronous>, transform_indices = @transform_1, window_bounds = array<i64: 16, 32>}, {transform_indices = @transform_2, window_bounds = array<i64: 8, 32>}]} {
    %c0 = arith.constant 0 : index
    %c0_0 = arith.constant 0 : index
    %0 = vector.load %arg1[%c0, %c0_0] : memref<8x16xf32, #tpu.memory_space<vmem>>, vector<8x16xf32>
    %c0_1 = arith.constant 0 : index
    %c0_2 = arith.constant 0 : index
    %1 = vector.load %arg2[%c0_1, %c0_2] : memref<16x32xf32, #tpu.memory_space<vmem>>, vector<16x32xf32>
    %cst = arith.constant dense<0.000000e+00> : vector<8x32xf32>
    %2 = tpu.matmul %0, %1, %cst {dimension_numbers = #tpu.dot_dimension_numbers<[1], [0], [0], [1], [0, 0, 1, 1], [], []>} : vector<8x16xf32>, vector<16x32xf32>, vector<8x32xf32> -> vector<8x32xf32>
    %c0_3 = arith.constant 0 : index
    %c0_4 = arith.constant 0 : index
    %3 = vector.load %arg3[%c0_3, %c0_4] : memref<8x32xf32, #tpu.memory_space<vmem>>, vector<8x32xf32>
    tpu.vector_store %arg3[%c0_3, %c0_4], %2 {strides = array<i32>} : memref<8x32xf32, #tpu.memory_space<vmem>>, vector<8x32xf32>,
    return
  }
  func.func @transform_0(%arg0: i32) -> (i32, i32) {
    %c0_i32 = arith.constant 0 : i32
    %c0_i32_0 = arith.constant 0 : i32
    return %arg0, %c0_i32 : i32, i32
  }
  func.func @transform_1(%arg0: i32) -> (i32, i32) {
    %c0_i32 = arith.constant 0 : i32
    %c0_i32_0 = arith.constant 0 : i32
    %c0_i32_1 = arith.constant 0 : i32
    return %c0_i32, %c0_i32_0 : i32, i32
  }
  func.func @transform_2(%arg0: i32) -> (i32, i32) {
    %c0_i32 = arith.constant 0 : i32
    %c0_i32_0 = arith.constant 0 : i32
    return %arg0, %c0_i32 : i32, i32
  }
}

</mosaic_0001>

<bundles_post_ra>
// kernel: tpu_custom_call.1
= control target key start
LH: loop header
LB: loop body
LE: loop exit
PB: predicated region body
PF: predicated region fallthrough
CT: control target
= control target key end

     0   :  { %7 = vsyncpa [#allocation3], 0  ;;  %s248_s0 = inlined_call_operand.hbm [shape: f32[8,16], index: 0, kind: input, shape index: {}]   ;;  %s249_s1 = inlined_call_operand.hbm [shape: f32[16,32], index: 1, kind: input, shape index: {}]   ;;  %s250_s2 = inlined_call_operand.hbm [shape: f32[8,32], index: 2, kind: output, shape index: {}]  }
   0x1   :  { %8 = vsyncpa [#allocation6], 0 }
   0x2   :  { %9 = vsyncpa [#allocation4], 0  ;;  %s217_s9 = smov [#allocation2]   ;;  %s218_s11 = smov [#allocation5]  }
   0x3   :  { %s16_s10 = sshll.u32 %s217_s9, 4  ;;  %s25_s12 = sshll.u32 %s218_s11, 4  ;;  %s17_s10 = int_to_ptr.vmem [resolvable:$true] %s16_s10  ;;  %s26_s12 = int_to_ptr.vmem [resolvable:$true] %s25_s12 }
   0x4   :  { %s159_s13 = scalar_lea.vmem %s17_s10, 128  ;;  %p164_p1 = scmp.lt.s32.totalorder %s17_s10, %s17_s10 }
   0x5   :  { %p160_p0 = scmp.ne.s32.totalorder %s17_s10, %s159_s13  ;;  %p165_p2 = scmp.lt.s32.totalorder %s159_s13, %s159_s13 }
   0x7   :  { %p166_p3 = por %p165_p2, %p164_p1 }
   0x9   :  { %p167_p4 = pnand %p166_p3, %p160_p0 }
   0xb   :  { %170 = shalt.err (!%p167_p4)
}
   0xc   :  { %19 = dma.hbm_to_vmem [thread:$0]  %s248_s0, 128, %s17_s10, [#allocation3]  }
   0xd   :  { %s179_s16 = scalar_lea.vmem %s26_s12, 256  ;;  %p184_p6 = scmp.lt.s32.totalorder %s26_s12, %s26_s12 }
   0xe   :  { %p180_p5 = scmp.ne.s32.totalorder %s26_s12, %s179_s16  ;;  %p185_p7 = scmp.lt.s32.totalorder %s179_s16, %s179_s16 }
  0x10   :  { %p186_p8 = por %p185_p7, %p184_p6 }
  0x12   :  { %p187_p9 = pnand %p186_p8, %p180_p5 }
  0x14   :  { %190 = shalt.err (!%p187_p9)
}
  0x15   :  { %s219_s17 = smov 128   ;;  %s220_s18 = smov 8  }
  0x16   :  { %31 = dma.hbm_to_vmem [thread:$0]  %s249_s1, 256, %s26_s12, [#allocation6], %s219_s17, %s219_s17, %s220_s18  }
  0x17   :  { %211 = dma.done.wait [#allocation3], 128  }
  0x18   :  { %212 = vsyncadd [#allocation3], 4294967168 }
  0x19   :  { %213 = dma.done.wait [#allocation6], 256  }
  0x1a   :  { %214 = vsyncadd [#allocation6], 4294967040  ;;  %v221_v0 = vmov 0.0   ;;  %vm222_vm0 = vmmov 0   ;;  %v40_v1 = vld [vmem:[#allocation5 + $0x8] sm:$0xff]  ;;  %v39_v2 = vld [vmem:[#allocation5] sm:$0xff] }
  0x1b   :  { %137 = vmatprep.subr.mxu0 %v221_v0  ;;  %141 = vmatprep.mubr.msk.f32.mxu0 %vm222_vm0, %v221_v0  ;;  %v38_v3 = vld [vmem:[#allocation2] sm:$0xff]  ;;  %vm41_vm1 = vcmask 130048   ;;  %s223_s0 = smov [#allocation7]   ;;  %vm115_vm2 = vcmask 261120  }
  0x1c   :  { %138 = vmatpush3.msra.mxu0 %v40_v1  ;;  %s123_s21 = sshll.u32 %s223_s0, 4  ;;  %s124_s21 = int_to_ptr.vmem [resolvable:$true] %s123_s21 }
  0x1d   :  { %139 = vmatprep.subr.mxu0 %v221_v0  ;;  %s191_s1 = scalar_lea.vmem %s124_s21, 128  ;;  %p196_p11 = scmp.lt.s32.totalorder %s124_s21, %s124_s21 }
  0x1e   :  { %140 = vmatpush3.msra.mxu0 %v39_v2  ;;  %p192_p10 = scmp.ne.s32.totalorder %s124_s21, %s191_s1  ;;  %p197_p12 = scmp.lt.s32.totalorder %s191_s1, %s191_s1 }
  0x1f   :  { %142 = vmatmul.mubr.msk.f32.vlgmr.msra.gmra.mxu0 %vm41_vm1, %v38_v3 }
  0x20   :  { %p198_p13 = por %p197_p12, %p196_p11 }
  0x22   :  { %p199_p0 = pnand %p198_p13, %p192_p10 }
  0xdf   :  { %v111_v4 = vpop.f32.mrf.mxu0 }
  0xe0   :  { %116 = vst.msk [vmem:[#allocation7] sm:$0xff] %vm115_vm2, %v111_v4 }
  0xe1   :  { %v143_v5 = vpop.f32.mrf.mxu0 }
  0xe2   :  { %202 = shalt.err (!%p199_p0)
}
  0xe3   :  { %126 = dma.vmem_to_hbm [thread:$0]  %s124_s21, 128, %s250_s2, [#allocation4]  }
  0xe4   :  { %215 = dma.done.wait [#allocation4], 128  }
  0xe5   :  { %216 = vsyncadd [#allocation4], 4294967168 }
  0xe6   :  { %130 = vsyncpa [#allocation3], 1 }
  0xe7   :  { %131 = vsyncpa [#allocation6], 1 }
  0xe8   :  { %132 = vsyncpa [#allocation4], 1 }

// kernel: tpu_custom_call.1
= control target key start
LH: loop header
LB: loop body
LE: loop exit
PB: predicated region body
PF: predicated region fallthrough
CT: control target
= control target key end

     0   :  { %7 = vsyncpa [#allocation3], 0  ;;  %s248_s0 = inlined_call_operand.hbm [shape: f32[8,16], index: 0, kind: input, shape index: {}]   ;;  %s249_s1 = inlined_call_operand.hbm [shape: f32[16,32], index: 1, kind: input, shape index: {}]   ;;  %s250_s2 = inlined_call_operand.hbm [shape: f32[8,32], index: 2, kind: output, shape index: {}]  }
   0x1   :  { %8 = vsyncpa [#allocation6], 0 }
   0x2   :  { %9 = vsyncpa [#allocation4], 0  ;;  %s217_s9 = smov [#allocation2]   ;;  %s218_s11 = smov [#allocation5]  }
   0x3   :  { %s16_s10 = sshll.u32 %s217_s9, 4  ;;  %s25_s12 = sshll.u32 %s218_s11, 4  ;;  %s17_s10 = int_to_ptr.vmem [resolvable:$true] %s16_s10  ;;  %s26_s12 = int_to_ptr.vmem [resolvable:$true] %s25_s12 }
   0x4   :  { %s159_s13 = scalar_lea.vmem %s17_s10, 128  ;;  %p164_p1 = scmp.lt.s32.totalorder %s17_s10, %s17_s10 }
   0x5   :  { %p160_p0 = scmp.ne.s32.totalorder %s17_s10, %s159_s13  ;;  %p165_p2 = scmp.lt.s32.totalorder %s159_s13, %s159_s13 }
   0x7   :  { %p166_p3 = por %p165_p2, %p164_p1 }
   0x9   :  { %p167_p4 = pnand %p166_p3, %p160_p0 }
   0xb   :  { %170 = shalt.err (!%p167_p4)
}
   0xc   :  { %19 = dma.hbm_to_vmem [thread:$0]  %s248_s0, 128, %s17_s10, [#allocation3]  }
   0xd   :  { %s179_s16 = scalar_lea.vmem %s26_s12, 256  ;;  %p184_p6 = scmp.lt.s32.totalorder %s26_s12, %s26_s12 }
   0xe   :  { %p180_p5 = scmp.ne.s32.totalorder %s26_s12, %s179_s16  ;;  %p185_p7 = scmp.lt.s32.totalorder %s179_s16, %s179_s16 }
  0x10   :  { %p186_p8 = por %p185_p7, %p184_p6 }
  0x12   :  { %p187_p9 = pnand %p186_p8, %p180_p5 }
  0x14   :  { %190 = shalt.err (!%p187_p9)
}
  0x15   :  { %s219_s17 = smov 128   ;;  %s220_s18 = smov 8  }
  0x16   :  { %31 = dma.hbm_to_vmem [thread:$0]  %s249_s1, 256, %s26_s12, [#allocation6], %s219_s17, %s219_s17, %s220_s18  }
  0x17   :  { %211 = dma.done.wait [#allocation3], 128  }
  0x18   :  { %212 = vsyncadd [#allocation3], 4294967168 }
  0x19   :  { %213 = dma.done.wait [#allocation6], 256  }
  0x1a   :  { %214 = vsyncadd [#allocation6], 4294967040  ;;  %v221_v0 = vmov 0.0   ;;  %vm222_vm0 = vmmov 0   ;;  %v40_v1 = vld [vmem:[#allocation5 + $0x8] sm:$0xff]  ;;  %v39_v2 = vld [vmem:[#allocation5] sm:$0xff] }
  0x1b   :  { %137 = vmatprep.subr.mxu0 %v221_v0  ;;  %141 = vmatprep.mubr.msk.f32.mxu0 %vm222_vm0, %v221_v0  ;;  %v38_v3 = vld [vmem:[#allocation2] sm:$0xff]  ;;  %vm41_vm1 = vcmask 130048   ;;  %s223_s0 = smov [#allocation7]   ;;  %vm115_vm2 = vcmask 261120  }
  0x1c   :  { %138 = vmatpush3.msra.mxu0 %v40_v1  ;;  %s123_s21 = sshll.u32 %s223_s0, 4  ;;  %s124_s21 = int_to_ptr.vmem [resolvable:$true] %s123_s21 }
  0x1d   :  { %139 = vmatprep.subr.mxu0 %v221_v0  ;;  %s191_s1 = scalar_lea.vmem %s124_s21, 128  ;;  %p196_p11 = scmp.lt.s32.totalorder %s124_s21, %s124_s21 }
  0x1e   :  { %140 = vmatpush3.msra.mxu0 %v39_v2  ;;  %p192_p10 = scmp.ne.s32.totalorder %s124_s21, %s191_s1  ;;  %p197_p12 = scmp.lt.s32.totalorder %s191_s1, %s191_s1 }
  0x1f   :  { %142 = vmatmul.mubr.msk.f32.vlgmr.msra.gmra.mxu0 %vm41_vm1, %v38_v3 }
  0x20   :  { %p198_p13 = por %p197_p12, %p196_p11 }
  0x22   :  { %p199_p0 = pnand %p198_p13, %p192_p10 }
  0xdf   :  { %v111_v4 = vpop.f32.mrf.mxu0 }
  0xe0   :  { %116 = vst.msk [vmem:[#allocation7] sm:$0xff] %vm115_vm2, %v111_v4 }
  0xe1   :  { %v143_v5 = vpop.f32.mrf.mxu0 }
  0xe2   :  { %202 = shalt.err (!%p199_p0)
}
  0xe3   :  { %126 = dma.vmem_to_hbm [thread:$0]  %s124_s21, 128, %s250_s2, [#allocation4]  }
  0xe4   :  { %215 = dma.done.wait [#allocation4], 128  }
  0xe5   :  { %216 = vsyncadd [#allocation4], 4294967168 }
  0xe6   :  { %130 = vsyncpa [#allocation3], 1 }
  0xe7   :  { %131 = vsyncpa [#allocation6], 1 }
  0xe8   :  { %132 = vsyncpa [#allocation4], 1 }

</bundles_post_ra>
